<compile_context>
chip_gen: v6e
topology: v6e:2x2x1
jax: 0.10.0
libtpu: 0.0.40
codegen_flags: <defaults>
</compile_context>

<pallas_src>
import functools

import jax
import jax.numpy as jnp
from jax.experimental import pallas as pl
from jax.experimental.pallas import tpu as pltpu


def _round_up(x, m):
    return (x + m - 1) // m * m


# ---------------------------------------------------------------------------
# Tiled fused linear:  out = x @ W + b   (fp32 accumulator, optional bf16 MXU)
# ---------------------------------------------------------------------------
def _linear_kernel(x_ref, w_ref, b_ref, o_ref, acc_ref):
    @pl.when(pl.program_id(2) == 0)
    def _():
        acc_ref[...] = jnp.zeros_like(acc_ref)

    acc_ref[...] += jnp.dot(
        x_ref[...], w_ref[...], preferred_element_type=jnp.float32
    )

    @pl.when(pl.program_id(2) == pl.num_programs(2) - 1)
    def _():
        o_ref[...] = (acc_ref[...] + b_ref[...].astype(jnp.float32)).astype(o_ref.dtype)


def _tile(dim, tile):
    """Return (tile_size, padded_dim).

    Small dims get a single full-extent block (allowed by the (8,128) rule);
    large dims are tiled and padded to a tile multiple so every axis stays
    double-buffered / pipelined (no un-pipelined full-extent fallback).
    """
    if dim <= tile:
        return dim, dim
    return tile, _round_up(dim, tile)


def linear(x2d, w, b, *, tm=256, tn=256, tk=512, compute_dtype=None, out_dtype=None):
    M, K = x2d.shape
    Kw, N = w.shape
    assert K == Kw
    if out_dtype is None:
        out_dtype = x2d.dtype
    if compute_dtype is not None:
        x2d = x2d.astype(compute_dtype)
        w = w.astype(compute_dtype)
    b = b.astype(jnp.float32)

    tm, Mp = _tile(M, tm)
    tn, Np = _tile(N, tn)
    tk, Kp = _tile(K, tk)
    if (Mp, Kp) != (M, K):
        x2d = jnp.pad(x2d, ((0, Mp - M), (0, Kp - K)))
    if (Kp, Np) != (K, N):
        w = jnp.pad(w, ((0, Kp - K), (0, Np - N)))
    if Np != N:
        b = jnp.pad(b, ((0, 0), (0, Np - N)))

    grid = (Mp // tm, Np // tn, Kp // tk)
    # TODO(synk): for the decode GEMV case (tiny M), deeper weight buffering
    # (pipeline_mode=pl.Buffered(3) on the W spec) can hide more of the weight DMA.
    out = pl.pallas_call(
        _linear_kernel,
        out_shape=jax.ShapeDtypeStruct((Mp, Np), out_dtype),
        grid=grid,
        in_specs=[
            pl.BlockSpec((tm, tk), lambda i, j, k: (i, k)),
            pl.BlockSpec((tk, tn), lambda i, j, k: (k, j)),
            pl.BlockSpec((1, tn), lambda i, j, k: (0, j)),
        ],
        out_specs=pl.BlockSpec((tm, tn), lambda i, j, k: (i, j)),
        scratch_shapes=[pltpu.VMEM((tm, tn), jnp.float32)],
        compiler_params=pltpu.CompilerParams(
            dimension_semantics=("parallel", "parallel", "arbitrary")
        ),
    )(x2d, w, b)
    if (Mp, Np) != (M, N):
        out = out[:M, :N]
    return out


# ---------------------------------------------------------------------------
# Attention: one grid step per batch element, natural (T|S, C) layout, heads
# split in-kernel with static lane slices.  I/O is lane-dense (last dim = C).
# ---------------------------------------------------------------------------
def _attn_kernel(q_ref, k_ref, v_ref, mask_ref, o_ref, *, n_head, scale):
    # q: (T, C), k/v: (S, C), mask: (T, S), o: (T, C)
    T, C = q_ref.shape
    D = C // n_head
    mask = mask_ref[...].astype(jnp.float32)
    for h in range(n_head):                      # static unroll over heads
        lo, hi = h * D, (h + 1) * D
        q = (q_ref[:, lo:hi].astype(jnp.float32) * scale).astype(q_ref.dtype)
        k = k_ref[:, lo:hi]
        v = v_ref[:, lo:hi]
        # QK^T on the MXU (contract D directly, no explicit transpose)
        qk = jnp.einsum("td,sd->ts", q, k, preferred_element_type=jnp.float32) + mask
        m = jnp.max(qk, axis=-1, keepdims=True)
        e = jnp.exp(qk - m)
        w = e * pl.reciprocal(jnp.sum(e, axis=-1, keepdims=True), approx=True)
        wv = jnp.dot(w.astype(v.dtype), v, preferred_element_type=jnp.float32)
        o_ref[:, lo:hi] = wv.astype(o_ref.dtype)


def attention(q, k, v, mask, n_head, scale):
    # q: (B, T, C), k/v: (B, S, C), mask: (T, S)   -- no transposes anywhere
    B, T, C = q.shape
    S = k.shape[1]
    # TODO(synk): for prefill-size T/S (and v7x's 64 MiB VMEM / 2 TCs) tile the
    # grid over (B, heads, q-blocks) with a flash-style running softmax over S.
    kern = functools.partial(_attn_kernel, n_head=n_head, scale=scale)
    return pl.pallas_call(
        kern,
        out_shape=jax.ShapeDtypeStruct((B, T, C), q.dtype),
        grid=(B,),
        in_specs=[
            pl.BlockSpec((None, T, C), lambda b: (b, 0, 0)),
            pl.BlockSpec((None, S, C), lambda b: (b, 0, 0)),
            pl.BlockSpec((None, S, C), lambda b: (b, 0, 0)),
            pl.BlockSpec((T, S), lambda b: (0, 0)),
        ],
        out_specs=pl.BlockSpec((None, T, C), lambda b: (b, 0, 0)),
        compiler_params=pltpu.CompilerParams(dimension_semantics=("parallel",)),
    )(q, k, v, mask)


# ---------------------------------------------------------------------------
# Params fusion (hoisted out of the per-step forward)
# ---------------------------------------------------------------------------
def prepare_params(params):
    fused = dict(params)
    fused["w_qkv"] = jnp.concatenate([params["wq"], params["wk"], params["wv"]], axis=1)
    fused["b_qkv"] = jnp.concatenate([params["bq"], params["bk"], params["bv"]], axis=1)
    return fused


# ---------------------------------------------------------------------------
# Module-equivalent forward (loop=True path)
# ---------------------------------------------------------------------------
def multi_head_attention_self(x, k_cache, v_cache, mask, fused_params, n_head,
                              *, compute_dtype=None):
    B, T, C = x.shape
    D = C // n_head
    scale = float(D) ** (-0.5)   # full softmax scale, applied once to q

    # Fused Q/K/V projection against the pre-fused [Wq | Wk | Wv]
    x2d = x.reshape(B * T, C)
    qkv = linear(x2d, fused_params["w_qkv"], fused_params["b_qkv"],
                 compute_dtype=compute_dtype, out_dtype=x.dtype)   # (B*T, 3C)
    q, k, v = jnp.split(qkv, 3, axis=1)
    q = q.reshape(B, T, C)
    k = k.reshape(B, T, C)
    v = v.reshape(B, T, C)

    # loop=True: shift cache by one and append new k/v.  The module's output is a
    # *larger* cache, so this is already a single read + write of the cache.
    # TODO(synk): in a real T==1 decode loop replace with a fixed-size ring buffer
    # updated in place (input_output_aliases / donated dynamic_update_slice).
    k_cache_new = jnp.concatenate([k_cache[:, 1:, :], k], axis=1)
    v_cache_new = jnp.concatenate([v_cache[:, 1:, :], v], axis=1)

    if compute_dtype is not None:
        q_a = q.astype(compute_dtype)
        k_a = k_cache_new.astype(compute_dtype)
        v_a = v_cache_new.astype(compute_dtype)
    else:
        q_a, k_a, v_a = q, k_cache_new, v_cache_new

    wv2d = attention(q_a, k_a, v_a, mask, n_head, scale).reshape(B * T, C)
    out = linear(wv2d, fused_params["wo"], fused_params["bo"],
                 compute_dtype=compute_dtype, out_dtype=x.dtype).reshape(B, T, C)
    return out, k_cache_new, v_cache_new


# ---------------------------------------------------------------------------
# Pure-JAX reference for verification
# ---------------------------------------------------------------------------
def reference(x, k_cache, v_cache, mask, params, n_head):
    B, T, C = x.shape
    D = C // n_head
    scale = float(D) ** (-0.25)
    q = x @ params["wq"] + params["bq"]
    k = x @ params["wk"] + params["bk"]
    v = x @ params["wv"] + params["bv"]
    k_cache_new = jnp.concatenate([k_cache[:, 1:, :], k], axis=1)
    v_cache_new = jnp.concatenate([v_cache[:, 1:, :], v], axis=1)
    S = k_cache_new.shape[1]
    qh = q.reshape(B, T, n_head, D).transpose(0, 2, 1, 3) * scale
    kh = k_cache_new.reshape(B, S, n_head, D).transpose(0, 2, 3, 1) * scale
    vh = v_cache_new.reshape(B, S, n_head, D).transpose(0, 2, 1, 3)
    qk = qh @ kh + mask
    w = jax.nn.softmax(qk, axis=-1)
    wv = (w @ vh).transpose(0, 2, 1, 3).reshape(B, T, C)
    out = wv @ params["wo"] + params["bo"]
    return out, k_cache_new, v_cache_new


# ---------------------------------------------------------------------------
if __name__ == "__main__":
    B, T, n_state, n_head = 2, 8, 32, 4
    S_cache = 9                      # cache shifts by 1 and appends T -> S = 16

    key = jax.random.PRNGKey(0)
    keys = jax.random.split(key, 12)

    def w_init(k, shape, s=0.1):
        return jax.random.normal(k, shape, dtype=jnp.float32) * s

    params = {
        "wq": w_init(keys[0], (n_state, n_state)),
        "bq": w_init(keys[1], (1, n_state)),
        "wk": w_init(keys[2], (n_state, n_state)),
        "bk": jnp.zeros((1, n_state), jnp.float32),   # key Linear has bias=False
        "wv": w_init(keys[3], (n_state, n_state)),
        "bv": w_init(keys[4], (1, n_state)),
        "wo": w_init(keys[5], (n_state, n_state)),
        "bo": w_init(keys[6], (1, n_state)),
    }
    fused_params = prepare_params(params)   # fused QKV weights built once, not per step

    x = jax.random.normal(keys[7], (B, T, n_state), dtype=jnp.float32)
    k_cache = jax.random.normal(keys[8], (B, S_cache, n_state), dtype=jnp.float32)
    v_cache = jax.random.normal(keys[9], (B, S_cache, n_state), dtype=jnp.float32)
    S = S_cache - 1 + T
    mask = jax.random.normal(keys[10], (T, S), dtype=jnp.float32) * 0.5

    # fp32 path (verification)
    out, kc, vc = multi_head_attention_self(x, k_cache, v_cache, mask,
                                            fused_params, n_head)
    jax.block_until_ready((out, kc, vc))

    ref_out, ref_kc, ref_vc = reference(x, k_cache, v_cache, mask, params, n_head)
    # tolerance covers the EUP approx reciprocal in the softmax denominator
    assert jnp.allclose(out, ref_out, atol=5e-3, rtol=5e-3), "output mismatch"
    assert jnp.allclose(kc, ref_kc, atol=1e-4, rtol=1e-4), "k_cache mismatch"
    assert jnp.allclose(vc, ref_vc, atol=1e-4, rtol=1e-4), "v_cache mismatch"

    # bf16 MXU path (fp32 accumulation) — the perf configuration; loose sanity check.
    out_bf, kc_bf, vc_bf = multi_head_attention_self(
        x, k_cache, v_cache, mask, fused_params, n_head, compute_dtype=jnp.bfloat16)
    jax.block_until_ready((out_bf, kc_bf, vc_bf))
    assert jnp.allclose(out_bf, ref_out, atol=5e-2, rtol=5e-2), "bf16 output mismatch"

    print("KERNEL_OK")
</pallas_src>

<mosaic_0001>
module attributes {stable_mosaic.version = 11 : i64} {
  func.func @_linear_kernel(%arg0: i32, %arg1: i32, %arg2: i32, %arg3: memref<16x32xf32, #tpu.memory_space<vmem>>, %arg4: memref<32x96xf32, #tpu.memory_space<vmem>>, %arg5: memref<1x96xf32, #tpu.memory_space<vmem>>, %arg6: memref<16x96xf32, #tpu.memory_space<vmem>>, %arg7: memref<16x96xf32, #tpu.memory_space<vmem>>) attributes {dimension_semantics = [#tpu.dimension_semantics<parallel>, #tpu.dimension_semantics<parallel>, #tpu.dimension_semantics<arbitrary>], iteration_bounds = array<i64: 1, 1, 1>, scalar_prefetch = 0 : i64, scratch_operands = 1 : i64, tpu.core_type = #tpu.core_type<tc>, window_params = [{transform_indices = @transform_0, window_bounds = array<i64: 16, 32>}, {transform_indices = @transform_1, window_bounds = array<i64: 32, 96>}, {transform_indices = @transform_2, window_bounds = array<i64: 1, 96>}, {transform_indices = @transform_3, window_bounds = array<i64: 16, 96>}]} {
    %c0_i32 = arith.constant 0 : i32
    %0 = arith.cmpi eq, %arg2, %c0_i32 : i32
    %1 = arith.extui %0 : i1 to i32
    %c0_i32_0 = arith.constant 0 : i32
    %2 = arith.cmpi ne, %1, %c0_i32_0 : i32
    scf.if %2 {
      %cst_10 = arith.constant 0.000000e+00 : f32
      %12 = vector.broadcast %cst_10 : f32 to vector<16x96xf32>
      %c0_11 = arith.constant 0 : index
      %c0_12 = arith.constant 0 : index
      %13 = vector.load %arg7[%c0_11, %c0_12] : memref<16x96xf32, #tpu.memory_space<vmem>>, vector<16x96xf32>
      tpu.vector_store %arg7[%c0_11, %c0_12], %12 {strides = array<i32>} : memref<16x96xf32, #tpu.memory_space<vmem>>, vector<16x96xf32>,
    } else {
    }
    %c0 = arith.constant 0 : index
    %c0_1 = arith.constant 0 : index
    %3 = vector.load %arg7[%c0, %c0_1] : memref<16x96xf32, #tpu.memory_space<vmem>>, vector<16x96xf32>
    %c0_2 = arith.constant 0 : index
    %c0_3 = arith.constant 0 : index
    %4 = vector.load %arg3[%c0_2, %c0_3] : memref<16x32xf32, #tpu.memory_space<vmem>>, vector<16x32xf32>
    %c0_4 = arith.constant 0 : index
    %c0_5 = arith.constant 0 : index
    %5 = vector.load %arg4[%c0_4, %c0_5] : memref<32x96xf32, #tpu.memory_space<vmem>>, vector<32x96xf32>
    %cst = arith.constant dense<0.000000e+00> : vector<16x96xf32>
    %6 = tpu.matmul %4, %5, %cst {dimension_numbers = #tpu.dot_dimension_numbers<[1], [0], [0], [1], [0, 0, 1, 1], [], []>} : vector<16x32xf32>, vector<32x96xf32>, vector<16x96xf32> -> vector<16x96xf32>
    %7 = arith.addf %3, %6 : vector<16x96xf32>
    %c0_6 = arith.constant 0 : index
    %c0_7 = arith.constant 0 : index
    %8 = vector.load %arg7[%c0_6, %c0_7] : memref<16x96xf32, #tpu.memory_space<vmem>>, vector<16x96xf32>
    tpu.vector_store %arg7[%c0_6, %c0_7], %7 {strides = array<i32>} : memref<16x96xf32, #tpu.memory_space<vmem>>, vector<16x96xf32>,
    %c0_i32_8 = arith.constant 0 : i32
    %9 = arith.cmpi eq, %arg2, %c0_i32_8 : i32
    %10 = arith.extui %9 : i1 to i32
    %c0_i32_9 = arith.constant 0 : i32
    %11 = arith.cmpi ne, %10, %c0_i32_9 : i32
    scf.if %11 {
      %c0_10 = arith.constant 0 : index
      %c0_11 = arith.constant 0 : index
      %12 = vector.load %arg7[%c0_10, %c0_11] : memref<16x96xf32, #tpu.memory_space<vmem>>, vector<16x96xf32>
      %c0_12 = arith.constant 0 : index
      %c0_13 = arith.constant 0 : index
      %13 = vector.load %arg5[%c0_12, %c0_13] : memref<1x96xf32, #tpu.memory_space<vmem>>, vector<1x96xf32>
      %14 = vector.broadcast %13 : vector<1x96xf32> to vector<16x96xf32>
      %15 = arith.addf %12, %14 : vector<16x96xf32>
      %c0_14 = arith.constant 0 : index
      %c0_15 = arith.constant 0 : index
      %16 = vector.load %arg6[%c0_14, %c0_15] : memref<16x96xf32, #tpu.memory_space<vmem>>, vector<16x96xf32>
      tpu.vector_store %arg6[%c0_14, %c0_15], %15 {strides = array<i32>} : memref<16x96xf32, #tpu.memory_space<vmem>>, vector<16x96xf32>,
    } else {
    }
    return
  }
  func.func @transform_0(%arg0: i32, %arg1: i32, %arg2: i32) -> (i32, i32) {
    %c0_i32 = arith.constant 0 : i32
    return %arg0, %arg2 : i32, i32
  }
  func.func @transform_1(%arg0: i32, %arg1: i32, %arg2: i32) -> (i32, i32) {
    %c0_i32 = arith.constant 0 : i32
    return %arg2, %arg1 : i32, i32
  }
  func.func @transform_2(%arg0: i32, %arg1: i32, %arg2: i32) -> (i32, i32) {
    %c0_i32 = arith.constant 0 : i32
    %c0_i32_0 = arith.constant 0 : i32
    return %c0_i32, %arg1 : i32, i32
  }
  func.func @transform_3(%arg0: i32, %arg1: i32, %arg2: i32) -> (i32, i32) {
    %c0_i32 = arith.constant 0 : i32
    return %arg0, %arg1 : i32, i32
  }
}

</mosaic_0001>

<bundles_post_ra>
// kernel: tpu_custom_call.1
= control target key start
LH: loop header
LB: loop body
LE: loop exit
PB: predicated region body
PF: predicated region fallthrough
CT: control target
= control target key end

     0   :  { %8 = vsyncpa [#allocation4], 0  ;;  %s326_s0 = inlined_call_operand.hbm [shape: f32[16,32], index: 0, kind: input, shape index: {}]   ;;  %s327_s1 = inlined_call_operand.hbm [shape: f32[32,96], index: 1, kind: input, shape index: {}]   ;;  %s328_s2 = inlined_call_operand.vmem [shape: f32[1,96], index: 2, kind: input, shape index: {}]   ;;  %s329_s3 = inlined_call_operand.hbm [shape: f32[16,96], index: 3, kind: output, shape index: {}]  }
   0x1   :  { %9 = vsyncpa [#allocation7], 0 }
   0x2   :  { %10 = vsyncpa [#allocation5], 0  ;;  %s271_s12 = smov [#allocation3]  }
   0x3   :  { %s16_s13 = sshll.u32 %s271_s12, 4  ;;  %s17_s13 = int_to_ptr.vmem [resolvable:$true] %s16_s13 }
   0x4   :  { %s213_s14 = scalar_lea.vmem %s17_s13, 256  ;;  %p218_p1 = scmp.lt.s32.totalorder %s17_s13, %s17_s13 }
   0x5   :  { %p214_p0 = scmp.ne.s32.totalorder %s17_s13, %s213_s14  ;;  %p219_p2 = scmp.lt.s32.totalorder %s213_s14, %s213_s14 }
   0x7   :  { %p220_p3 = por %p219_p2, %p218_p1 }
   0x9   :  { %p221_p4 = pnand %p220_p3, %p214_p0 }
   0xb   :  { %224 = shalt.err (!%p221_p4)
}
   0xc   :  { %s272_s15 = smov 128   ;;  %s273_s16 = smov 8  }
   0xd   :  { %22 = dma.hbm_to_vmem [thread:$0]  %s326_s0, 256, %s17_s13, [#allocation4], %s272_s15, %s272_s15, %s273_s16  }
   0xe   :  { %s274_s19 = smov [#allocation6]  }
   0xf   :  { %s28_s20 = sshll.u32 %s274_s19, 4  ;;  %s29_s20 = int_to_ptr.vmem [resolvable:$true] %s28_s20 }
  0x10   :  { %s233_s21 = scalar_lea.vmem %s29_s20, 512  ;;  %p238_p6 = scmp.lt.s32.totalorder %s29_s20, %s29_s20 }
  0x11   :  { %p234_p5 = scmp.ne.s32.totalorder %s29_s20, %s233_s21  ;;  %p239_p7 = scmp.lt.s32.totalorder %s233_s21, %s233_s21 }
  0x13   :  { %p240_p8 = por %p239_p7, %p238_p6 }
  0x15   :  { %p241_p9 = pnand %p240_p8, %p234_p5 }
  0x17   :  { %244 = shalt.err (!%p241_p9)
}
  0x18   :  { %34 = dma.hbm_to_vmem [thread:$0]  %s327_s1, 512, %s29_s20, [#allocation7], %s272_s15, %s272_s15, %s273_s16  }
  0x19   :  { %265 = dma.done.wait [#allocation4], 256  }
  0x1a   :  { %266 = vsyncadd [#allocation4], 4294967040 }
  0x1b   :  { %267 = dma.done.wait [#allocation7], 512  }
  0x1c   :  { %268 = vsyncadd [#allocation7], 4294966784  ;;  %vm47_vm0 = vcmask 785408   ;;  %v275_v0 = vmov 0.0   ;;  %vm58_vm1 = vcmask 261120   ;;  %v57_v1 = vld [vmem:[#allocation6 + $0x18] sm:$0xff] }
  0x1d   :  { %49 = vst.msk [vmem:[#allocation2 + $0x8] sm:$0xff] %vm47_vm0, %v275_v0  ;;  %48 = vst.msk [vmem:[#allocation2] sm:$0xff] %vm47_vm0, %v275_v0  ;;  %v56_v2 = vld [vmem:[#allocation6 + $0x10] sm:$0xff]  ;;  %188 = vmatprep.subr.mxu0 %v57_v1  ;;  %v55_v4 = vld [vmem:[#allocation6 + $0x8] sm:$0xff]  ;;  %s276_s24 = smov [#allocation8]  }
  0x1e   :  { %v52_v3 = vld [vmem:[#allocation3] sm:$0xff]  ;;  %189 = vmatpush3.msra.mxu0 %v57_v1  ;;  %v54_v5 = vld [vmem:[#allocation6] sm:$0xff]  ;;  %v53_v6 = vld [vmem:[#allocation3 + $0x8] sm:$0xff]  ;;  %s166_s25 = sshll.u32 %s276_s24, 4  ;;  %s167_s25 = int_to_ptr.vmem [resolvable:$true] %s166_s25 }
  0x1f   :  { %196 = vmatprep.mubr.msk.f32.mxu0 %vm58_vm1, %v52_v3  ;;  %190 = vmatprep.subr.mxu0 %v56_v2  ;;  %v181_v13 = vld [vmem:[%s328_s2] ss:$0 sm:$0xff]  ;;  %s245_s26 = scalar_lea.vmem %s167_s25, 256  ;;  %p250_p11 = scmp.lt.s32.totalorder %s167_s25, %s167_s25 }
  0x20   :  { %191 = vmatpush3.msra.mxu0 %v56_v2  ;;  %p246_p10 = scmp.ne.s32.totalorder %s167_s25, %s245_s26  ;;  %p251_p12 = scmp.lt.s32.totalorder %s245_s26, %s245_s26 }
  0x21   :  { %192 = vmatprep.subr.mxu0 %v55_v4 }
  0x22   :  { %193 = vmatpush3.msra.mxu0 %v55_v4  ;;  %p252_p13 = por %p251_p12, %p250_p11 }
  0x23   :  { %194 = vmatprep.subr.mxu0 %v54_v5 }
  0x24   :  { %195 = vmatpush3.msra.mxu0 %v54_v5  ;;  %v51_v7 = vld [vmem:[#allocation2 + $0x8] sm:$0xff]  ;;  %v50_v9 = vld [vmem:[#allocation2] sm:$0xff]  ;;  %p253_p0 = pnand %p252_p13, %p246_p10 }
  0x25   :  { %197 = vmatmul.mubr.msk.f32.vlgmr.msra.gmra.mxu0 %vm58_vm1, %v53_v6 }
  0xe5   :  { %v198_v8 = vpop.f32.mrf.mxu0 }
  0xe6   :  { %v141_v10 = vadd.f32 %v198_v8, %v51_v7 }
  0xe7   :  { %v131_v11 = vpop.f32.mrf.mxu0 }
  0xe8   :  { %144 = vst.msk [vmem:[#allocation2 + $0x8] sm:$0xff] %vm47_vm0, %v141_v10  ;;  %v140_v12 = vadd.f32 %v131_v11, %v50_v9 }
  0xea   :  { %143 = vst.msk [vmem:[#allocation2] sm:$0xff] %vm47_vm0, %v140_v12 }
  0xef   :  { %v149_v14 = vld [vmem:[#allocation2 + $0x8] sm:$0xff] }
  0xf0   :  { %v158_v15 = vadd.f32 %v181_v13, %v149_v14 }
  0xf1   :  { %v148_v16 = vld [vmem:[#allocation2] sm:$0xff] }
  0xf2   :  { %v157_v17 = vadd.f32 %v181_v13, %v148_v16  ;;  %160 = vst.msk [vmem:[#allocation8 + $0x8] sm:$0xff] %vm47_vm0, %v158_v15 }
  0xf4   :  { %159 = vst.msk [vmem:[#allocation8] sm:$0xff] %vm47_vm0, %v157_v17 }
  0xf5   :  { %256 = shalt.err (!%p253_p0)
}
  0xf6   :  { %172 = dma.vmem_to_hbm [thread:$0]  %s167_s25, 256, %s329_s3, [#allocation5], %s272_s15, %s272_s15, %s273_s16  }
  0xf7   :  { %269 = dma.done.wait [#allocation5], 256  }
  0xf8   :  { %270 = vsyncadd [#allocation5], 4294967040 }
  0xf9   :  { %176 = vsyncpa [#allocation4], 1 }
  0xfa   :  { %177 = vsyncpa [#allocation7], 1 }
  0xfb   :  { %178 = vsyncpa [#allocation5], 1 }

</bundles_post_ra>
